<compile_context>
chip_gen: v7x
topology: tpu7x:2x2x1
jax: 0.10.0
libtpu: 0.0.40
codegen_flags: <defaults>
</compile_context>

<pallas_src>
import jax
import jax.numpy as jnp
from jax.experimental import pallas as pl
from jax.experimental.pallas import tpu as pltpu

LANE = 128
MAX_TM = 8192     # max lane tile over rays
NROWS = 16        # 5 tensors * 3 channel rows + 1 mask row
NSTATS = 8        # stat rows in the output (5 used, 3 zero pad)
NCORES = 2        # leading "parallel" grid axis (v7x megacore; free elsewhere)


def _round_up(a, b):
    return ((a + b - 1) // b) * b


def _loss_kernel(x_ref, out_ref):
    j = pl.program_id(1)                               # reduction step

    x = x_ref[...]                                     # (NROWS, TM) f32

    def _nsq(lo):                                      # sum of squares over 3 rows
        c = x[lo:lo + 3, :]
        return jnp.sum(c * c, axis=0, keepdims=True)   # (1, TM)

    off = jnp.sqrt(_nsq(0))                            # ||resd||
    gterm = (jnp.sqrt(_nsq(3)) - 1.0) ** 2             # (||gradients|| - 1)^2
    ogterm = (jnp.sqrt(_nsq(6)) - 1.0) ** 2            # (||observed_grad|| - 1)^2
    d = x[9:12, :] - x[12:15, :]                       # rgb_map - rgb
    m = x[15:16, :]                                    # mask (0/1 float)
    img = jnp.sum(d * d, axis=0, keepdims=True) * m    # masked squared error
    zero = jnp.zeros_like(off)

    stats = jnp.concatenate(
        [off, gterm, ogterm, img, m, zero, zero, zero], axis=0)  # (NSTATS, TM)

    # Accumulate straight into the VMEM-resident output block (one dense store).
    @pl.when(j == 0)
    def _():
        out_ref[...] = stats

    @pl.when(j > 0)
    def _():
        out_ref[...] += stats


def _partial_sums(packed, tm, spc):
    """packed: (NROWS, Mp) f32 with Mp == NCORES * spc * tm."""
    return pl.pallas_call(
        _loss_kernel,
        out_shape=jax.ShapeDtypeStruct((NCORES, NSTATS, tm), jnp.float32),
        grid_spec=pltpu.PrefetchScalarGridSpec(
            num_scalar_prefetch=0,
            grid=(NCORES, spc),
            in_specs=[pl.BlockSpec((NROWS, tm),
                                   lambda c, j: (0, c * spc + j))],
            out_specs=pl.BlockSpec((None, NSTATS, tm),
                                   lambda c, j: (c, 0, 0)),
        ),
        compiler_params=pltpu.CompilerParams(
            dimension_semantics=("parallel", "arbitrary")),
    )(packed)


def network_wrapper_forward(ret, batch):
    """Mirrors NetworkWrapper.forward given renderer outputs `ret` and `batch`.

    ret:   dict with 'resd', 'gradients', 'observed_gradients', 'rgb_map',
           each (B, N, 3) float32.
    batch: dict with 'rgb' (B, N, 3) float32 and 'mask_at_box' (B, N) bool.
    """
    B, N, C = ret['rgb_map'].shape
    assert C == 3
    M = B * N

    # --- glue: pack everything into one dense channel-major (16, M) stream.
    # TODO(synk): have the renderer emit this layout directly to skip this pass.
    flat = lambda x: x.reshape(M, 3).astype(jnp.float32)
    mask_col = batch['mask_at_box'].reshape(M, 1).astype(jnp.float32)
    packed = jnp.concatenate(
        [flat(ret['resd']), flat(ret['gradients']),
         flat(ret['observed_gradients']), flat(ret['rgb_map']),
         flat(batch['rgb']), mask_col], axis=1).T          # (16, M)

    # --- tiling: big lane tiles; zero-pad rays to NCORES * SPC * TM.
    m128 = _round_up(M, LANE)
    tm = min(MAX_TM, m128)
    mp = _round_up(m128, NCORES * tm)
    spc = mp // (NCORES * tm)
    if mp != M:
        packed = jnp.pad(packed, ((0, 0), (0, mp - M)))

    out = _partial_sums(packed, tm, spc)                   # (NCORES, NSTATS, tm)
    sums = jnp.sum(out, axis=(0, 2))                       # tiny final reduce

    # Zero padding contributes 0 to the offset / img / mask rows and exactly
    # 1.0 per padded lane to the grad / ograd rows ((||0|| - 1)^2): subtract it.
    pad_bias = float(mp - M)
    offset_loss = sums[0] / M
    grad_loss = (sums[1] - pad_bias) / M
    ograd_loss = (sums[2] - pad_bias) / M
    # NOTE: NaN if the mask is empty -- same behavior as the torch reference.
    img_loss = sums[3] / (3.0 * sums[4])

    loss = 0.02 * offset_loss + 0.01 * grad_loss + 0.01 * ograd_loss + img_loss
    scalar_stats = {
        'offset_loss': offset_loss,
        'grad_loss': grad_loss,
        'ograd_loss': ograd_loss,
        'img_loss': img_loss,
        'loss': loss,
    }
    image_stats = {}
    return ret, loss, scalar_stats, image_stats


def _reference(ret, batch):
    resd = ret['resd']
    grads = ret['gradients']
    ograds = ret['observed_gradients']
    mask = batch['mask_at_box']
    offset_loss = jnp.mean(jnp.linalg.norm(resd, axis=2))
    grad_loss = jnp.mean((jnp.linalg.norm(grads, axis=2) - 1.0) ** 2)
    ograd_loss = jnp.mean((jnp.linalg.norm(ograds, axis=2) - 1.0) ** 2)
    diff = (ret['rgb_map'] - batch['rgb']) ** 2
    mf = mask.astype(jnp.float32)[..., None]
    img_loss = jnp.sum(diff * mf) / (3.0 * jnp.sum(mf))
    loss = 0.02 * offset_loss + 0.01 * grad_loss + 0.01 * ograd_loss + img_loss
    return loss


if __name__ == "__main__":
    key = jax.random.PRNGKey(0)
    B, N, C = 2, 512, 3          # B*N = 1024 rays
    ks = jax.random.split(key, 6)

    ret = {
        'resd': 0.1 * jax.random.normal(ks[0], (B, N, C), jnp.float32),
        'gradients': jax.random.normal(ks[1], (B, N, C), jnp.float32),
        'observed_gradients': jax.random.normal(ks[2], (B, N, C), jnp.float32),
        'rgb_map': jax.random.uniform(ks[3], (B, N, C), jnp.float32),
    }
    batch = {
        'rgb': jax.random.uniform(ks[4], (B, N, C), jnp.float32),
        'mask_at_box': jax.random.uniform(ks[5], (B, N)) > 0.3,
    }

    _, loss, scalar_stats, _ = network_wrapper_forward(ret, batch)
    loss = jax.block_until_ready(loss)

    ref_loss = _reference(ret, batch)
    assert jnp.allclose(loss, ref_loss, rtol=1e-5, atol=1e-5), (loss, ref_loss)

    print("KERNEL_OK")
</pallas_src>

<mosaic_0001>
module attributes {stable_mosaic.version = 11 : i64} {
  func.func @_loss_kernel(%arg0: i32, %arg1: i32, %arg2: memref<16x1024xf32, #tpu.memory_space<vmem>>, %arg3: memref<1x8x1024xf32, #tpu.memory_space<vmem>>) attributes {dimension_semantics = [#tpu.dimension_semantics<parallel>, #tpu.dimension_semantics<arbitrary>], iteration_bounds = array<i64: 2, 1>, scalar_prefetch = 0 : i64, scratch_operands = 0 : i64, tpu.core_type = #tpu.core_type<tc>, window_params = [{transform_indices = @transform_0, window_bounds = array<i64: 16, 1024>}, {transform_indices = @transform_1, window_bounds = array<i64: 1, 8, 1024>}]} {
    %c0 = arith.constant 0 : index
    %c0_0 = arith.constant 0 : index
    %0 = vector.load %arg2[%c0, %c0_0] : memref<16x1024xf32, #tpu.memory_space<vmem>>, vector<16x1024xf32>
    %1 = vector.extract_strided_slice %0 {offsets = [0, 0], sizes = [3, 1024], strides = [1, 1]} : vector<16x1024xf32> to vector<3x1024xf32>
    %2 = arith.mulf %1, %1 : vector<3x1024xf32>
    %cst = arith.constant dense<0.000000e+00> : vector<1024xf32>
    %3 = vector.multi_reduction <add>, %2, %cst [0] : vector<3x1024xf32> to vector<1024xf32>
    %4 = vector.shape_cast %3 : vector<1024xf32> to vector<1x1024xf32>
    %5 = math.sqrt %4 : vector<1x1024xf32>
    %6 = vector.extract_strided_slice %0 {offsets = [3, 0], sizes = [3, 1024], strides = [1, 1]} : vector<16x1024xf32> to vector<3x1024xf32>
    %7 = arith.mulf %6, %6 : vector<3x1024xf32>
    %cst_1 = arith.constant dense<0.000000e+00> : vector<1024xf32>
    %8 = vector.multi_reduction <add>, %7, %cst_1 [0] : vector<3x1024xf32> to vector<1024xf32>
    %9 = vector.shape_cast %8 : vector<1024xf32> to vector<1x1024xf32>
    %10 = math.sqrt %9 : vector<1x1024xf32>
    %cst_2 = arith.constant 1.000000e+00 : f32
    %11 = vector.broadcast %cst_2 : f32 to vector<1x1024xf32>
    %12 = arith.subf %10, %11 : vector<1x1024xf32>
    %13 = arith.mulf %12, %12 : vector<1x1024xf32>
    %14 = vector.extract_strided_slice %0 {offsets = [6, 0], sizes = [3, 1024], strides = [1, 1]} : vector<16x1024xf32> to vector<3x1024xf32>
    %15 = arith.mulf %14, %14 : vector<3x1024xf32>
    %cst_3 = arith.constant dense<0.000000e+00> : vector<1024xf32>
    %16 = vector.multi_reduction <add>, %15, %cst_3 [0] : vector<3x1024xf32> to vector<1024xf32>
    %17 = vector.shape_cast %16 : vector<1024xf32> to vector<1x1024xf32>
    %18 = math.sqrt %17 : vector<1x1024xf32>
    %cst_4 = arith.constant 1.000000e+00 : f32
    %19 = vector.broadcast %cst_4 : f32 to vector<1x1024xf32>
    %20 = arith.subf %18, %19 : vector<1x1024xf32>
    %21 = arith.mulf %20, %20 : vector<1x1024xf32>
    %22 = vector.extract_strided_slice %0 {offsets = [9, 0], sizes = [3, 1024], strides = [1, 1]} : vector<16x1024xf32> to vector<3x1024xf32>
    %23 = vector.extract_strided_slice %0 {offsets = [12, 0], sizes = [3, 1024], strides = [1, 1]} : vector<16x1024xf32> to vector<3x1024xf32>
    %24 = arith.subf %22, %23 : vector<3x1024xf32>
    %25 = vector.extract_strided_slice %0 {offsets = [15, 0], sizes = [1, 1024], strides = [1, 1]} : vector<16x1024xf32> to vector<1x1024xf32>
    %26 = arith.mulf %24, %24 : vector<3x1024xf32>
    %cst_5 = arith.constant dense<0.000000e+00> : vector<1024xf32>
    %27 = vector.multi_reduction <add>, %26, %cst_5 [0] : vector<3x1024xf32> to vector<1024xf32>
    %28 = vector.shape_cast %27 : vector<1024xf32> to vector<1x1024xf32>
    %29 = arith.mulf %28, %25 : vector<1x1024xf32>
    %cst_6 = arith.constant 0.000000e+00 : f32
    %30 = vector.broadcast %cst_6 : f32 to vector<1x1024xf32>
    %31 = tpu.concatenate %5, %13, %21, %29, %25, %30, %30, %30 in 0 : vector<1x1024xf32>, vector<1x1024xf32>, vector<1x1024xf32>, vector<1x1024xf32>, vector<1x1024xf32>, vector<1x1024xf32>, vector<1x1024xf32>, vector<1x1024xf32> -> vector<8x1024xf32>
    %c0_i32 = arith.constant 0 : i32
    %32 = arith.cmpi eq, %arg1, %c0_i32 : i32
    %33 = arith.extui %32 : i1 to i32
    %c0_i32_7 = arith.constant 0 : i32
    %34 = arith.cmpi ne, %33, %c0_i32_7 : i32
    scf.if %34 {
      %c0_10 = arith.constant 0 : index
      %c0_11 = arith.constant 0 : index
      %c0_12 = arith.constant 0 : index
      %38 = vector.load %arg3[%c0_10, %c0_11, %c0_12] : memref<1x8x1024xf32, #tpu.memory_space<vmem>>, vector<1x8x1024xf32>
      %39 = vector.shape_cast %38 : vector<1x8x1024xf32> to vector<8x1024xf32>
      %40 = vector.shape_cast %31 : vector<8x1024xf32> to vector<1x8x1024xf32>
      tpu.vector_store %arg3[%c0_10, %c0_11, %c0_12], %40 {strides = array<i32>} : memref<1x8x1024xf32, #tpu.memory_space<vmem>>, vector<1x8x1024xf32>,
    } else {
    }
    %c0_i32_8 = arith.constant 0 : i32
    %35 = arith.cmpi sgt, %arg1, %c0_i32_8 : i32
    %36 = arith.extui %35 : i1 to i32
    %c0_i32_9 = arith.constant 0 : i32
    %37 = arith.cmpi ne, %36, %c0_i32_9 : i32
    scf.if %37 {
      %c0_10 = arith.constant 0 : index
      %c0_11 = arith.constant 0 : index
      %c0_12 = arith.constant 0 : index
      %38 = vector.load %arg3[%c0_10, %c0_11, %c0_12] : memref<1x8x1024xf32, #tpu.memory_space<vmem>>, vector<1x8x1024xf32>
      %39 = vector.shape_cast %38 : vector<1x8x1024xf32> to vector<8x1024xf32>
      %40 = arith.addf %39, %31 : vector<8x1024xf32>
      %c0_13 = arith.constant 0 : index
      %c0_14 = arith.constant 0 : index
      %c0_15 = arith.constant 0 : index
      %41 = vector.load %arg3[%c0_13, %c0_14, %c0_15] : memref<1x8x1024xf32, #tpu.memory_space<vmem>>, vector<1x8x1024xf32>
      %42 = vector.shape_cast %41 : vector<1x8x1024xf32> to vector<8x1024xf32>
      %43 = vector.shape_cast %40 : vector<8x1024xf32> to vector<1x8x1024xf32>
      tpu.vector_store %arg3[%c0_13, %c0_14, %c0_15], %43 {strides = array<i32>} : memref<1x8x1024xf32, #tpu.memory_space<vmem>>, vector<1x8x1024xf32>,
    } else {
    }
    return
  }
  func.func @transform_0(%arg0: i32, %arg1: i32) -> (i32, i32) {
    %c1_i32 = arith.constant 1 : i32
    %0 = arith.muli %arg0, %c1_i32 : i32
    %1 = arith.addi %0, %arg1 : i32
    %c0_i32 = arith.constant 0 : i32
    %c0_i32_0 = arith.constant 0 : i32
    return %c0_i32, %1 : i32, i32
  }
  func.func @transform_1(%arg0: i32, %arg1: i32) -> (i32, i32, i32) {
    %c0_i32 = arith.constant 0 : i32
    %c0_i32_0 = arith.constant 0 : i32
    %c0_i32_1 = arith.constant 0 : i32
    return %arg0, %c0_i32, %c0_i32_0 : i32, i32, i32
  }
}

</mosaic_0001>

<bundles_post_ra>
// kernel: tpu_custom_call.1
= control target key start
LH: loop header
LB: loop body
LE: loop exit
PB: predicated region body
PF: predicated region fallthrough
CT: control target
= control target key end

     0   :  { %6 = vsyncpa [#allocation3], 0  ;;  %s1892_s0 = inlined_call_operand.hbm [shape: f32[16,2048], index: 0, kind: input, shape index: {}]   ;;  %s1893_s1 = inlined_call_operand.hbm [shape: f32[2,8,1024], index: 1, kind: output, shape index: {}]  }
   0x1   :  { %8 = vsyncpa [#allocation3 + $0x1], 0 }
   0x2   :  { %9 = vsyncpa [#allocation4], 0 }
   0x3   :  { %11 = vsyncpa [#allocation4 + $0x1], 0  ;;  %s1240_s6 = smov 0   ;;  %s1242_s7 = smov 0  }
   0x4   :  { %s1244_s8 = smov 0   ;;  %s1246_s9 = smov 0  }
   0x5   :  { %s1248_s10 = smov 0   ;;  %s1250_s11 = smov 0  }
   0x6 LB: > { %s965_s12 = sadd.s32 4294967295, %s1223_s11   ;;  %s966_s13 = sadd.s32 4294967294, %s1223_s11   ;;  %s1223_s11 = sphi %s1250_s11, %s17_s11   ;;  %s1219_s10 = sphi %s1248_s10, %s1907_s10   ;;  %s1215_s9 = sphi %s1246_s9, %s1906_s9   ;;  %s1211_s8 = sphi %s1244_s8, %s1905_s8   ;;  %s1207_s7 = sphi %s1242_s7, %s1904_s7   ;;  %s1203_s6 = sphi %s1240_s6, %s1903_s6  }
   0x7   : > { %s29_s14 = sadd.s32 1, %s1219_s10  ;;  %s38_s15 = sadd.s32 1, %s1211_s8 }
   0x8   : > { %p31_p0 = scmp.ge.s32.totalorder %s29_s14, 2  ;;  %p45_p1 = scmp.ne.s32.totalorder %s1211_s8, %s1207_s7 }
   0x9   : > { %p46_p2 = scmp.eq.s32.totalorder %s1223_s11, 0  ;;  %p51_p3 = scmp.ne.s32.totalorder %s1207_s7, %s1203_s6 }
   0xa   : > { %s1909_s14 = smov (%p31_p0, %s29_s14), 0  ;;  %p52_p5 = scmp.eq.s32.totalorder %s965_s12, 0 }
   0xb   : > { %p1281_p4 = por %p46_p2, %p45_p1  ;;  %s35_s17 = ssub.s32 %s1219_s10, %s1909_s14 }
   0xc   : > { %p75_p6 = scmp.eq.s32.totalorder %s965_s12, 1  ;;  %p36_p7 = scmp.eq.s32.totalorder %s35_s17, 0 }
   0xd   : > { %p1287_p8 = por %p52_p5, %p51_p3  ;;  %p81_p10 = scmp.eq.s32.totalorder %s966_s13, 1 }
   0xe   : > { %p1291_p9 = por %p75_p6, %p45_p1  ;;  %p1010_p13 = scmp.lt.s32.totalorder %s1223_s11, 2 }
   0xf   : > { %s1296_s20 = scalar_select %p36_p7, %s1211_s8, %s38_s15  }
  0x10   : > { %s1897_s19 = scalar_select %p1291_p9, 1, 0 }
  0x11   : > { %p1298_p11 = por %p81_p10, %p51_p3  ;;  %s101_s22 = sand.u32 1, %s1211_s8  }
  0x12   : > { %s969_s23 = sshll.u32 %s101_s22, 7  ;;  %s996_s24 = sshll.u32 %s1219_s10, 10 }
  0x13   : > { %s1898_s21 = scalar_select %p1298_p11, 1, 0 }
  0x14   : > { %s1309_s27 = scalar_lea.hbm %s1892_s0, %s996_s24  ;;  %s105_s28 = scalar_lea.vmem [#allocation2], %s969_s23 }
  0x15   : > { %s113_s29 = sshll.u32 %s105_s28, 4  ;;  %p1315_p0 = pnand %p1010_p13, %p1281_p4  ;;  %s1311_s29 = int_to_ptr.vmem [resolvable:$true] %s113_s29 }
  0x16   : > { %s1319_s2 = scalar_lea.sflag [#allocation3], %s101_s22  ;;  %s1111_s3 = scalar_lea.hbm %s1309_s27, 2048 }
  0x17   : > { %p1112_p1 = scmp.ne.s32.totalorder %s1309_s27, %s1111_s3  ;;  %p1113_p2 = pneg %p1315_p0 }
  0x18   : > { %s1116_s12 = scalar_lea.hbm %s1892_s0, 4096  ;;  %p1117_p4 = scmp.lt.u32.totalorder %s1309_s27, %s1892_s0 }
  0x19   : > { %p1114_p3 = pnand %p1113_p2, %p1112_p1  ;;  %p1118_p6 = scmp.lt.u32.totalorder %s1116_s12, %s1111_s3 }
  0x1a   : > { %p1120_p10 = scmp.lt.u32.totalorder %s1111_s3, %s1309_s27 }
  0x1b   : > { %p1115_p5 = pneg %p1114_p3  ;;  %p1119_p7 = por %p1118_p6, %p1117_p4 }
  0x1d   : > { %p1121_p13 = por %p1120_p10, %p1119_p7 }
  0x1f   : > { %p1122_p12 = pnand %p1121_p13, %p1115_p5 }
  0x21   : > { %1125 = shalt.err (!%p1122_p12)
}
  0x22   : > { %s1126_s16 = scalar_lea.vmem %s1311_s29, 2048  ;;  %s1225_s17 = smov [#allocation2]  }
  0x23   : > { %p1127_p1 = scmp.ne.s32.totalorder %s1311_s29, %s1126_s16  ;;  %s1131_s22 = sshll.u32 %s1225_s17, 4  ;;  %s1132_s22 = int_to_ptr.vmem [resolvable:$false] %s1131_s22 }
  0x24   : > { %s1133_s23 = scalar_lea.vmem %s1132_s22, 4096  ;;  %p1134_p9 = scmp.lt.s32.totalorder %s1311_s29, %s1132_s22 }
  0x25   : > { %p1129_p3 = pnand %p1127_p1, %p1113_p2  ;;  %p1135_p4 = scmp.lt.s32.totalorder %s1133_s23, %s1126_s16 }
  0x27   : > { %p1130_p11 = pneg %p1129_p3  ;;  %p1136_p6 = por %p1135_p4, %p1134_p9 }
  0x29   : > { %p1137_p7 = pnand %p1136_p6, %p1130_p11 }
  0x2b   : > { %1140 = shalt.err (!%p1137_p7)
}
  0x2c   : > { %s1226_s24 = smov 2048   ;;  %s1227_s25 = smov 1024  }
  0x2d   : > { %s1228_s26 = smov 64   ;;  %p972_p12 = scmp.ge.s32.totalorder %s1223_s11, 1 }
  0x2e   : > { %1005 = dma.hbm_to_vmem [thread:$0]  (!%p1315_p0), %s1309_s27, 2048, %s1311_s29, %s1319_s2, %s1226_s24, %s1227_s25, %s1228_s26  }
  0x2f   : > { %p121_p2 = scmp.lt.s32.totalorder %s1223_s11, 3 }
  0x31   : > { %p122_p5 = pnand %p972_p12, %p121_p2 }
  0x32   : > { %s1350_s28 = sand.u32 (!%p122_p5), 1, %s1207_s7  }
  0x33   : > { %125 = sbr.rel (%p122_p5) target bundleno = 236 (0xec), region = 24  ;;  %s973_s3 = sshll.u32 (!%p122_p5), %s1350_s28, 7 }
  0x34   : > { %s128_s4 = scalar_lea.sflag (!%p122_p5), [#allocation3], %s1350_s28  ;;  %s1354_s5 = scalar_lea.vmem (!%p122_p5), [#allocation2], %s973_s3 }
  0x3a   : > { %1194 = dma.done.wait (%p1287_p8), %s128_s4, 2048  }
  0x3b   : > { %1196 = vsyncadd (%p1287_p8), %s128_s4, 4294965248  ;;  %v152_v0 = vld [vmem:[%s1354_s5] sm:$0xff]  ;;  %v153_v2 = vld [vmem:[%s1354_s5 + $0x8] sm:$0xff]  ;;  %vm176_vm0 = vcmask 1042432   ;;  %vm457_vm1 = vcmask 1041408   ;;  %vm770_vm9 = vcmask 1040384  }
  0x3c   : > { %v1362_v1 = vld [vmem:[%s1354_s5 + $0x40] sm:$0xff]  ;;  %v168_v3 = vmul.f32 %v152_v0, %v152_v0  ;;  %v1369_v6 = vld [vmem:[%s1354_s5 + $0x48] sm:$0xff]  ;;  %v169_v7 = vmul.f32 %v153_v2, %v153_v2  ;;  %v154_v60 = vld [vmem:[%s1354_s5 + $0x10] sm:$0xff]  ;;  %vm795_vm12 = vcmask 1043456   ;;  %vm804_vm13 = vcmask 1044480   ;;  %s974_s18 = sshll.u32 %s1350_s28, 6 }
  0x3d   : > { %v441_v4 = vmul.f32 %v1362_v1, %v1362_v1  ;;  %v626_v5 = vrot.slane %v1362_v1, 3  ;;  %v442_v8 = vmul.f32 %v1369_v6, %v1369_v6  ;;  %v627_v9 = vrot.slane %v1369_v6, 3  ;;  %v1396_v62 = vld [vmem:[%s1354_s5 + $0x50] sm:$0xff]  ;;  %s1506_s27 = scalar_lea.vmem [#allocation5], %s974_s18  ;;  %s997_s29 = sshll.u32 %s1215_s9, 10 }
  0x3e   : > { %v177_v10 = vsel %vm176_vm0, %v168_v3, 0.0  ;;  %v297_v11 = vrot.slane %v168_v3, 3  ;;  %v458_v12 = vrot.slane %v168_v3, 6  ;;  %v184_v16 = vsel %vm176_vm0, %v169_v7, 0.0  ;;  %s886_s30 = sshll.u32 %s1506_s27, 4  ;;  %s1841_s13 = scalar_lea.hbm %s1893_s1, %s997_s29  ;;  %s1843_s30 = int_to_ptr.vmem [resolvable:$true] %s886_s30 }
  0x3f   : > { %v459_v13 = vrot.slane %v441_v4, 6  ;;  %v178_v14 = vrot.slane %v177_v10, 4  ;;  %v642_v15 = vsub.f32 %v1362_v1, %v626_v5  ;;  %v298_v17 = vrot.slane %v169_v7, 3  ;;  %s872_s9 = scalar_lea.sflag [#allocation4], %s1350_s28  ;;  %s1141_s15 = scalar_lea.vmem %s1843_s30, 1024 }
  0x40   : > { %v313_v18 = vsel %vm176_vm0, %v297_v11, 0.0  ;;  %v185_v20 = vrot.slane %v184_v16, 4  ;;  %v461_v21 = vrot.slane %v169_v7, 6  ;;  %v462_v29 = vrot.slane %v442_v8, 6  ;;  %p1142_p8 = scmp.ne.s32.totalorder %s1843_s30, %s1141_s15  ;;  %p1900_p9 = scmp.ne.s32.totalorder %s1897_s19, 0 }
  0x41   : > { %v460_v19 = vsel %vm457_vm1, %v458_v12, %v459_v13  ;;  %v179_v22 = vadd.f32 %v178_v14, %v177_v10  ;;  %v314_v23 = vrot.slane %v313_v18, 4  ;;  %v650_v25 = vmul.f32 %v642_v15, %v642_v15  ;;  %s1229_s16 = smov [#allocation5]  }
  0x42   : > { %v490_v24 = vsel %vm176_vm0, %v460_v19, 0.0  ;;  %v186_v27 = vadd.f32 %v185_v20, %v184_v16  ;;  %v320_v28 = vsel %vm176_vm0, %v298_v17, 0.0  ;;  %v463_v36 = vsel %vm457_vm1, %v461_v21, %v462_v29  ;;  %p1143_p11 = pnand %p1142_p8, %p1900_p9  ;;  %s1145_s17 = sshll.u32 %s1229_s16, 4  ;;  %s1146_s17 = int_to_ptr.vmem [resolvable:$false] %s1145_s17 }
  0x43   : > { %v491_v26 = vrot.slane %v490_v24, 4  ;;  %v180_v30 = vrot.slane %v179_v22, 2  ;;  %v315_v31 = vadd.f32 %v314_v23, %v313_v18  ;;  %v666_v32 = vrot.slane %v650_v25, 1  ;;  %s1147_s22 = scalar_lea.vmem %s1146_s17, 2048  ;;  %p1148_p10 = scmp.lt.s32.totalorder %s1843_s30, %s1146_s17 }
  0x44   : > { %v321_v33 = vrot.slane %v320_v28, 4  ;;  %v187_v35 = vrot.slane %v186_v27, 2  ;;  %v643_v37 = vsub.f32 %v1369_v6, %v627_v9  ;;  %v497_v45 = vsel %vm176_vm0, %v463_v36, 0.0  ;;  %p1144_p0 = pneg %p1143_p11  ;;  %p1149_p13 = scmp.lt.s32.totalorder %s1147_s22, %s1141_s15 }
  0x45   : > { %v492_v34 = vadd.f32 %v491_v26, %v490_v24  ;;  %v181_v38 = vadd.f32 %v180_v30, %v179_v22  ;;  %v316_v39 = vrot.slane %v315_v31, 2  ;;  %v682_v40 = vsel %vm176_vm0, %v666_v32, 0.0 }
  0x46   : > { %v322_v41 = vadd.f32 %v321_v33, %v320_v28  ;;  %v683_v43 = vrot.slane %v682_v40, 4  ;;  %v188_v44 = vadd.f32 %v187_v35, %v186_v27  ;;  %v498_v49 = vrot.slane %v497_v45, 4  ;;  %p1150_p1 = por %p1149_p13, %p1148_p10 }
  0x47   : > { %v493_v42 = vrot.slane %v492_v34, 2  ;;  %v182_v46 = vrot.slane %v181_v38, 1  ;;  %v317_v47 = vadd.f32 %v316_v39, %v315_v31  ;;  %v651_v53 = vmul.f32 %v643_v37, %v643_v37 }
  0x48   : > { %v323_v48 = vrot.slane %v322_v41, 2  ;;  %v684_v51 = vadd.f32 %v683_v43, %v682_v40  ;;  %v189_v52 = vrot.slane %v188_v44, 1  ;;  %v499_v61 = vadd.f32 %v498_v49, %v497_v45  ;;  %p1151_p3 = pnand %p1150_p1, %p1144_p0 }
  0x49   : > { %v494_v50 = vadd.f32 %v493_v42, %v492_v34  ;;  %v1389_v54 = vadd.f32 %v182_v46, %v181_v38  ;;  %v318_v55 = vrot.slane %v317_v47, 1  ;;  %v667_v3 = vrot.slane %v651_v53, 1 }
  0x4a   : > { %v324_v56 = vadd.f32 %v323_v48, %v322_v41  ;;  %v685_v58 = vrot.slane %v684_v51, 2  ;;  %v1391_v59 = vadd.f32 %v189_v52, %v188_v44  ;;  %v170_v7 = vmul.f32 %v154_v60, %v154_v60 }
  0x4b   : > { %v495_v57 = vrot.slane %v494_v50, 1  ;;  %1063 = vrsqrt.f32 %v1389_v54  ;;  %v1398_v63 = vadd.f32 %v318_v55, %v317_v47  ;;  %v443_v8 = vmul.f32 %v1396_v62, %v1396_v62 }
  0x4c   : > { %v686_v2 = vadd.f32 %v685_v58, %v684_v51  ;;  %1065 = vrsqrt.f32 %v1391_v59  ;;  %v325_v4 = vrot.slane %v324_v56, 1  ;;  %vm235_vm2 = vcmp.eq.f32.partialorder %v1389_v54, inf }
  0x4d   : > { %v1400_v0 = vadd.f32 %v495_v57, %v494_v50  ;;  %1067 = vrsqrt.f32 %v1398_v63  ;;  %v238_v10 = vand.u32 2147483648, %v1389_v54  ;;  %v245_v11 = vand.u32 2147483648, %v1391_v59 }
  0x4e   : > { %vm237_vm3 = vcmp.eq.f32.partialorder %v1389_v54, 0.0  ;;  %vm371_vm4 = vcmp.eq.f32.partialorder %v1398_v63, inf  ;;  %v687_v12 = vrot.slane %v686_v2, 1  ;;  %v1412_v13 = vadd.f32 %v325_v4, %v324_v56 }
  0x4f   : > { %1069 = vrsqrt.f32 %v1400_v0  ;;  %v500_v14 = vrot.slane %v499_v61, 2  ;;  %v689_v15 = vsel %vm176_vm0, %v667_v3, 0.0  ;;  %vm373_vm5 = vcmp.eq.f32.partialorder %v1398_v63, 0.0 }
  0x50   : > { %v690_v16 = vrot.slane %v689_v15, 4  ;;  %v191_v17 = vsel %vm176_vm0, %v170_v7, 0.0  ;;  %v299_v18 = vrot.slane %v170_v7, 3  ;;  %v374_v19 = vand.u32 2147483648, %v1398_v63 }
  0x51   : > { %v688_v20 = vadd.f32 %v687_v12, %v686_v2  ;;  %1071 = vrsqrt.f32 %v1412_v13  ;;  %v464_v21 = vrot.slane %v170_v7, 6  ;;  %vm548_vm6 = vcmp.eq.f32.partialorder %v1400_v0, inf }
  0x52   : > { %v501_v22 = vadd.f32 %v500_v14, %v499_v61  ;;  %v691_v23 = vadd.f32 %v690_v16, %v689_v15  ;;  %v192_v24 = vrot.slane %v191_v17, 4  ;;  %vm550_vm7 = vcmp.eq.f32.partialorder %v1400_v0, 0.0 }
  0x53   : > { %vm242_vm8 = vcmp.eq.f32.partialorder %v1391_v59, inf  ;;  %v327_v25 = vsel %vm176_vm0, %v299_v18, 0.0  ;;  %v465_v26 = vrot.slane %v443_v8, 6  ;;  %v628_v27 = vrot.slane %v1396_v62, 3 }
  0x54   : > { %v502_v29 = vrot.slane %v501_v22, 1  ;;  %v692_v30 = vrot.slane %v691_v23, 2  ;;  %v193_v31 = vadd.f32 %v192_v24, %v191_v17  ;;  %v328_v32 = vrot.slane %v327_v25, 4 }
  0x55   : > { %v1064_v28 = vpop.eup %1063  ;;  %v1426_v34 = vmul.f32 %v688_v20, %v1362_v1  ;;  %v466_v35 = vsel %vm457_vm1, %v464_v21, %v465_v26  ;;  %v644_v36 = vsub.f32 %v1396_v62, %v628_v27  ;;  %v551_v38 = vand.u32 2147483648, %v1400_v0 }
  0x56   : > { %v234_v33 = vmul.f32 %v1064_v28, %v1389_v54  ;;  %v1066_v37 = vpop.eup %1065  ;;  %v1433_v39 = vadd.f32 %v502_v29, %v501_v22  ;;  %v693_v40 = vadd.f32 %v692_v30, %v691_v23  ;;  %v194_v41 = vrot.slane %v193_v31, 2 }
  0x57   : > { %v1068_v42 = vpop.eup %1067  ;;  %vm378_vm10 = vcmp.eq.f32.partialorder %v1412_v13, inf  ;;  %vm380_vm11 = vcmp.eq.f32.partialorder %v1412_v13, 0.0  ;;  %v329_v44 = vadd.f32 %v328_v32, %v327_v25  ;;  %v381_v47 = vand.u32 2147483648, %v1412_v13 }
  0x58   : > { %v236_v43 = vsel %vm235_vm2, %v1389_v54, %v234_v33  ;;  %v370_v46 = vmul.f32 %v1068_v42, %v1398_v63  ;;  %1073 = vrsqrt.f32 %v1433_v39  ;;  %v504_v48 = vsel %vm176_vm0, %v466_v35, 0.0  ;;  %v1501_v42 = vld [vmem:[%s1354_s5 + $0x58] sm:$0xff] }
  0x59   : > { %v1070_v45 = vpop.eup %1069  ;;  %v754_v50 = vrot.slane %v1426_v34, 4  ;;  %v241_v51 = vmul.f32 %v1066_v37, %v1391_v59  ;;  %vm244_vm14 = vcmp.eq.f32.partialorder %v1391_v59, 0.0  ;;  %v652_v52 = vmul.f32 %v644_v36, %v644_v36 }
  0x5a   : > { %v547_v49 = vmul.f32 %v1070_v45, %v1400_v0  ;;  %v239_v53 = vsel %vm237_vm3, %v238_v10, %v236_v43  ;;  %v372_v55 = vsel %vm371_vm4, %v1398_v63, %v370_v46  ;;  %vm813_vm15 = vcmask 1045504  }
  0x5b   : > { %v694_v56 = vrot.slane %v693_v40, 1  ;;  %v195_v57 = vadd.f32 %v194_v41, %v193_v31  ;;  %v1072_v58 = vpop.eup %1071  ;;  %v375_v60 = vsel %vm373_vm5, %v374_v19, %v372_v55  ;;  %vm822_vm2 = vcmask 1046528  }
  0x5c   : > { %v549_v61 = vsel %vm548_vm6, %v1400_v0, %v547_v49  ;;  %v330_v2 = vrot.slane %v329_v44, 2  ;;  %v505_v3 = vrot.slane %v504_v48, 4  ;;  %v975_v54 = vadd.f32 -1.0, %v375_v60 }
  0x5d   : > { %v552_v4 = vsel %vm550_vm7, %v551_v38, %v549_v61  ;;  %v377_v7 = vmul.f32 %v1072_v58, %v1412_v13  ;;  %v695_v8 = vadd.f32 %v694_v56, %v693_v40  ;;  %v196_v12 = vrot.slane %v195_v57, 1  ;;  %v155_v40 = vld [vmem:[%s1354_s5 + $0x18] sm:$0xff] }
  0x5e   : > { %v983_v10 = vadd.f32 -1.0, %v552_v4  ;;  %v331_v14 = vadd.f32 %v330_v2, %v329_v44  ;;  %v506_v63 = vadd.f32 %v505_v3, %v504_v48  ;;  %v433_v15 = vmul.f32 %v975_v54, %v975_v54  ;;  %v156_v48 = vld [vmem:[%s1354_s5 + $0x20] sm:$0xff] }
  0x5f   : > { %v243_v16 = vsel %vm242_vm8, %v1391_v59, %v241_v51  ;;  %v379_v17 = vsel %vm378_vm10, %v1412_v13, %v377_v7  ;;  %v668_v18 = vrot.slane %v652_v52, 1  ;;  %v1469_v20 = vadd.f32 %v196_v12, %v195_v57 }
  0x60   : > { %v610_v0 = vmul.f32 %v983_v10, %v983_v10  ;;  %v382_v19 = vsel %vm380_vm11, %v381_v47, %v379_v17  ;;  %v332_v21 = vrot.slane %v331_v14, 1  ;;  %v771_v22 = vsel %vm770_vm9, %v239_v53, %v433_v15 }
  0x61   : > { %v976_v23 = vadd.f32 -1.0, %v382_v19  ;;  %v739_v24 = vmul.f32 %v695_v8, %v1369_v6  ;;  %v507_v25 = vrot.slane %v506_v63, 2  ;;  %vm555_vm3 = vcmp.eq.f32.partialorder %v1433_v39, inf }
  0x62   : > { %v779_v26 = vsel %vm457_vm1, %v771_v22, %v610_v0  ;;  %vm557_vm4 = vcmp.eq.f32.partialorder %v1433_v39, 0.0  ;;  %1075 = vrsqrt.f32 %v1469_v20  ;;  %v1074_v13 = vpop.eup %1073  ;;  %v558_v30 = vand.u32 2147483648, %v1433_v39 }
  0x63   : > { %v787_v28 = vsel %vm176_vm0, %v779_v26, %v754_v50  ;;  %v434_v29 = vmul.f32 %v976_v23, %v976_v23  ;;  %v1480_v31 = vadd.f32 %v332_v21, %v331_v14  ;;  %v554_v33 = vmul.f32 %v1074_v13, %v1433_v39 }
  0x64   : > { %v796_v32 = vsel %vm795_vm12, %v787_v28, %v626_v5  ;;  %v508_v34 = vadd.f32 %v507_v25, %v506_v63  ;;  %v696_v35 = vsel %vm176_vm0, %v668_v18, 0.0  ;;  %v246_v37 = vsel %vm244_vm14, %v245_v11, %v243_v16 }
  0x65   : > { %v805_v36 = vsel %vm804_vm13, %v796_v32, 0.0  ;;  %v755_v38 = vrot.slane %v739_v24, 4  ;;  %1077 = vrsqrt.f32 %v1480_v31  ;;  %v556_v5 = vsel %vm555_vm3, %v1433_v39, %v554_v33 }
  0x66   : > { %v814_v1 = vsel %vm813_vm15, %v805_v36, 0.0  ;;  %vm249_vm5 = vcmp.eq.f32.partialorder %v1469_v20, inf  ;;  %v252_v41 = vand.u32 2147483648, %v1469_v20  ;;  %v559_v11 = vsel %vm557_vm4, %v558_v30, %v556_v5 }
  0x67   : > { %v823_v59 = vsel %vm822_vm2, %v814_v1, 0.0  ;;  %v509_v43 = vrot.slane %v508_v34, 1  ;;  %v697_v44 = vrot.slane %v696_v35, 4  ;;  %v984_v45 = vadd.f32 -1.0, %v559_v11 }
  0x68   : > { %835 = vst [vmem:[%s1506_s27] sm:$0xff] %v823_v59  ;;  %v772_v46 = vsel %vm770_vm9, %v246_v37, %v434_v29  ;;  %vm385_vm6 = vcmp.eq.f32.partialorder %v1480_v31, inf  ;;  %v171_v47 = vmul.f32 %v155_v40, %v155_v40  ;;  %vm387_vm7 = vcmp.eq.f32.partialorder %v1480_v31, 0.0 }
  0x69   : > { %v1513_v49 = vadd.f32 %v509_v43, %v508_v34  ;;  %v698_v50 = vadd.f32 %v697_v44, %v696_v35  ;;  %v444_v39 = vmul.f32 %v1501_v42, %v1501_v42  ;;  %v611_v51 = vmul.f32 %v984_v45, %v984_v45  ;;  %v1561_v45 = vld [vmem:[%s1354_s5 + $0x60] sm:$0xff] }
  0x6a   : > { %vm251_vm8 = vcmp.eq.f32.partialorder %v1469_v20, 0.0  ;;  %v198_v52 = vsel %vm176_vm0, %v171_v47, 0.0  ;;  %v300_v53 = vrot.slane %v171_v47, 3  ;;  %v629_v55 = vrot.slane %v1501_v42, 3 }
  0x6b   : > { %v388_v56 = vand.u32 2147483648, %v1480_v31  ;;  %1079 = vrsqrt.f32 %v1513_v49  ;;  %v467_v57 = vrot.slane %v171_v47, 6  ;;  %v1522_v58 = vmul.f32 %v156_v48, %v156_v48 }
  0x6c   : > { %v1076_v60 = vpop.eup %1075  ;;  %v780_v61 = vsel %vm457_vm1, %v772_v46, %v611_v51  ;;  %v699_v2 = vrot.slane %v698_v50, 2  ;;  %v199_v3 = vrot.slane %v198_v52, 4  ;;  %v334_v54 = vsel %vm176_vm0, %v300_v53, 0.0 }
  0x6d   : > { %v788_v4 = vsel %vm176_vm0, %v780_v61, %v755_v38  ;;  %v248_v7 = vmul.f32 %v1076_v60, %v1469_v20  ;;  %vm562_vm10 = vcmp.eq.f32.partialorder %v1513_v49, inf  ;;  %v335_v8 = vrot.slane %v334_v54, 4 }
  0x6e   : > { %v468_v10 = vrot.slane %v444_v39, 6  ;;  %v797_v12 = vsel %vm795_vm12, %v788_v4, %v627_v9  ;;  %v700_v14 = vadd.f32 %v699_v2, %v698_v50  ;;  %v200_v63 = vadd.f32 %v199_v3, %v198_v52 }
  0x6f   : > { %v645_v15 = vsub.f32 %v1501_v42, %v629_v55  ;;  %v1078_v16 = vpop.eup %1077  ;;  %v806_v17 = vsel %vm804_vm13, %v797_v12, 0.0  ;;  %vm564_vm11 = vcmp.eq.f32.partialorder %v1513_v49, 0.0  ;;  %v336_v18 = vadd.f32 %v335_v8, %v334_v54 }
  0x70   : > { %v469_v0 = vsel %vm457_vm1, %v467_v57, %v468_v10  ;;  %v815_v19 = vsel %vm813_vm15, %v806_v17, 0.0  ;;  %v250_v6 = vsel %vm249_vm5, %v1469_v20, %v248_v7  ;;  %v384_v9 = vmul.f32 %v1078_v16, %v1480_v31 }
  0x71   : > { %v701_v21 = vrot.slane %v700_v14, 1  ;;  %v824_v22 = vsel %vm822_vm2, %v815_v19, 0.0  ;;  %v201_v23 = vrot.slane %v200_v63, 2  ;;  %v337_v24 = vrot.slane %v336_v18, 2 }
  0x72   : > { %v511_v25 = vsel %vm176_vm0, %v469_v0, 0.0  ;;  %836 = vst [vmem:[%s1506_s27 + $0x8] sm:$0xff] %v824_v22  ;;  %v386_v26 = vsel %vm385_vm6, %v1480_v31, %v384_v9  ;;  %v653_v29 = vmul.f32 %v645_v15, %v645_v15  ;;  %v205_v34 = vsel %vm176_vm0, %v1522_v58, 0.0 }
  0x73   : > { %v702_v13 = vadd.f32 %v701_v21, %v700_v14  ;;  %v512_v28 = vrot.slane %v511_v25, 4  ;;  %v389_v30 = vsel %vm387_vm7, %v388_v56, %v386_v26  ;;  %v202_v32 = vadd.f32 %v201_v23, %v200_v63 }
  0x74   : > { %v338_v33 = vadd.f32 %v337_v24, %v336_v18  ;;  %v977_v35 = vadd.f32 -1.0, %v389_v30  ;;  %v565_v36 = vand.u32 2147483648, %v1513_v49  ;;  %v669_v38 = vrot.slane %v653_v29, 1 }
  0x75   : > { %v513_v37 = vadd.f32 %v512_v28, %v511_v25  ;;  %v1080_v40 = vpop.eup %1079  ;;  %v253_v1 = vsel %vm251_vm8, %v252_v41, %v250_v6  ;;  %v203_v5 = vrot.slane %v202_v32, 1  ;;  %v206_v59 = vrot.slane %v205_v34, 4  ;;  %v157_v25 = vld [vmem:[%s1354_s5 + $0x28] sm:$0xff] }
  0x76   : > { %v339_v31 = vrot.slane %v338_v33, 1  ;;  %v561_v11 = vmul.f32 %v1080_v40, %v1513_v49  ;;  %v740_v43 = vmul.f32 %v702_v13, %v1396_v62  ;;  %v301_v46 = vrot.slane %v1522_v58, 3 }
  0x77   : > { %v514_v44 = vrot.slane %v513_v37, 2  ;;  %v435_v47 = vmul.f32 %v977_v35, %v977_v35  ;;  %v1564_v48 = vadd.f32 %v203_v5, %v202_v32  ;;  %v703_v20 = vsel %vm176_vm0, %v669_v38, 0.0 }
  0x78   : > { %v1566_v50 = vadd.f32 %v339_v31, %v338_v33  ;;  %v563_v41 = vsel %vm562_vm10, %v1513_v49, %v561_v11  ;;  %v704_v51 = vrot.slane %v703_v20, 4  ;;  %v207_v52 = vadd.f32 %v206_v59, %v205_v34 }
  0x79   : > { %v515_v39 = vadd.f32 %v514_v44, %v513_v37  ;;  %v566_v53 = vsel %vm564_vm11, %v565_v36, %v563_v41  ;;  %1081 = vrsqrt.f32 %v1564_v48  ;;  %v445_v56 = vmul.f32 %v1561_v45, %v1561_v45  ;;  %v1623_v41 = vld [vmem:[%s1354_s5 + $0x68] sm:$0xff] }
  0x7a   : > { %v985_v57 = vadd.f32 -1.0, %v566_v53  ;;  %1083 = vrsqrt.f32 %v1566_v50  ;;  %v756_v60 = vrot.slane %v740_v43, 4  ;;  %v773_v61 = vsel %vm770_vm9, %v253_v1, %v435_v47 }
  0x7b   : > { %v516_v2 = vrot.slane %v515_v39, 1  ;;  %v705_v3 = vadd.f32 %v704_v51, %v703_v20  ;;  %v208_v4 = vrot.slane %v207_v52, 2  ;;  %v341_v7 = vsel %vm176_vm0, %v301_v46, 0.0 }
  0x7c   : > { %v612_v54 = vmul.f32 %v985_v57, %v985_v57  ;;  %v470_v49 = vrot.slane %v1522_v58, 6  ;;  %v342_v12 = vrot.slane %v341_v7, 4  ;;  %v471_v14 = vrot.slane %v445_v56, 6 }
  0x7d   : > { %v1581_v8 = vadd.f32 %v516_v2, %v515_v39  ;;  %v706_v10 = vrot.slane %v705_v3, 2  ;;  %v209_v15 = vadd.f32 %v208_v4, %v207_v52  ;;  %v630_v16 = vrot.slane %v1561_v45, 3 }
  0x7e   : > { %v781_v63 = vsel %vm457_vm1, %v773_v61, %v612_v54  ;;  %vm256_vm14 = vcmp.eq.f32.partialorder %v1564_v48, inf  ;;  %v259_v18 = vand.u32 2147483648, %v1564_v48  ;;  %vm392_vm3 = vcmp.eq.f32.partialorder %v1566_v50, inf }
  0x7f   : > { %v789_v17 = vsel %vm176_vm0, %v781_v63, %v756_v60  ;;  %1085 = vrsqrt.f32 %v1581_v8  ;;  %v707_v0 = vadd.f32 %v706_v10, %v705_v3  ;;  %v210_v19 = vrot.slane %v209_v15, 1 }
  0x80   : > { %v798_v58 = vsel %vm795_vm12, %v789_v17, %v628_v27  ;;  %vm258_vm4 = vcmp.eq.f32.partialorder %v1564_v48, 0.0  ;;  %v343_v9 = vadd.f32 %v342_v12, %v341_v7  ;;  %v472_v21 = vsel %vm457_vm1, %v470_v49, %v471_v14 }
  0x81   : > { %v807_v6 = vsel %vm804_vm13, %v798_v58, 0.0  ;;  %v646_v22 = vsub.f32 %v1561_v45, %v630_v16  ;;  %v708_v23 = vrot.slane %v707_v0, 1  ;;  %v1600_v27 = vadd.f32 %v210_v19, %v209_v15 }
  0x82   : > { %v816_v62 = vsel %vm813_vm15, %v807_v6, 0.0  ;;  %v518_v24 = vsel %vm176_vm0, %v472_v21, 0.0  ;;  %v344_v28 = vrot.slane %v343_v9, 2  ;;  %vm394_vm5 = vcmp.eq.f32.partialorder %v1566_v50, 0.0 }
  0x83   : > { %v1082_v26 = vpop.eup %1081  ;;  %v825_v13 = vsel %vm822_vm2, %v816_v62, 0.0  ;;  %v519_v29 = vrot.slane %v518_v24, 4  ;;  %v654_v30 = vmul.f32 %v646_v22, %v646_v22  ;;  %v395_v34 = vand.u32 2147483648, %v1566_v50 }
  0x84   : > { %v1084_v32 = vpop.eup %1083  ;;  %837 = vst [vmem:[%s1506_s27 + $0x10] sm:$0xff] %v825_v13  ;;  %v255_v33 = vmul.f32 %v1082_v26, %v1564_v48  ;;  %v709_v35 = vadd.f32 %v708_v23, %v707_v0  ;;  %1087 = vrsqrt.f32 %v1600_v27  ;;  %v345_v37 = vadd.f32 %v344_v28, %v343_v9  ;;  %v158_v13 = vld [vmem:[%s1354_s5 + $0x30] sm:$0xff] }
  0x85   : > { %v391_v36 = vmul.f32 %v1084_v32, %v1566_v50  ;;  %v173_v38 = vmul.f32 %v157_v25, %v157_v25  ;;  %vm569_vm6 = vcmp.eq.f32.partialorder %v1581_v8, inf  ;;  %v572_v40 = vand.u32 2147483648, %v1581_v8 }
  0x86   : > { %v520_v1 = vadd.f32 %v519_v29, %v518_v24  ;;  %v670_v5 = vrot.slane %v654_v30, 1  ;;  %v257_v31 = vsel %vm256_vm14, %v1564_v48, %v255_v33  ;;  %v346_v11 = vrot.slane %v345_v37, 1 }
  0x87   : > { %v393_v59 = vsel %vm392_vm3, %v1566_v50, %v391_v36  ;;  %v212_v43 = vsel %vm176_vm0, %v173_v38, 0.0  ;;  %v741_v46 = vmul.f32 %v709_v35, %v1501_v42  ;;  %vm571_vm7 = vcmp.eq.f32.partialorder %v1581_v8, 0.0 }
  0x88   : > { %v396_v44 = vsel %vm394_vm5, %v395_v34, %v393_v59  ;;  %v521_v47 = vrot.slane %v520_v1, 2  ;;  %v710_v20 = vsel %vm176_vm0, %v670_v5, 0.0  ;;  %v1625_v52 = vadd.f32 %v346_v11, %v345_v37 }
  0x89   : > { %v1086_v39 = vpop.eup %1085  ;;  %v978_v51 = vadd.f32 -1.0, %v396_v44  ;;  %v711_v53 = vrot.slane %v710_v20, 4  ;;  %v213_v56 = vrot.slane %v212_v43, 4  ;;  %v302_v60 = vrot.slane %v173_v38, 3 }
  0x8a   : > { %v568_v57 = vmul.f32 %v1086_v39, %v1581_v8  ;;  %v522_v50 = vadd.f32 %v521_v47, %v520_v1  ;;  %1089 = vrsqrt.f32 %v1625_v52  ;;  %v446_v2 = vmul.f32 %v1623_v41, %v1623_v41 }
  0x8b   : > { %v436_v61 = vmul.f32 %v978_v51, %v978_v51  ;;  %v260_v3 = vsel %vm258_vm4, %v259_v18, %v257_v31  ;;  %v712_v7 = vadd.f32 %v711_v53, %v710_v20  ;;  %v757_v10 = vrot.slane %v741_v46, 4 }
  0x8c   : > { %v570_v54 = vsel %vm569_vm6, %v1581_v8, %v568_v57  ;;  %v523_v4 = vrot.slane %v522_v50, 1  ;;  %vm263_vm8 = vcmp.eq.f32.partialorder %v1600_v27, inf  ;;  %v214_v12 = vadd.f32 %v213_v56, %v212_v43 }
  0x8d   : > { %v573_v49 = vsel %vm571_vm7, %v572_v40, %v570_v54  ;;  %v348_v14 = vsel %vm176_vm0, %v302_v60, 0.0  ;;  %v713_v17 = vrot.slane %v712_v7, 2  ;;  %v774_v18 = vsel %vm770_vm9, %v260_v3, %v436_v61 }
  0x8e   : > { %v986_v63 = vadd.f32 -1.0, %v573_v49  ;;  %v1639_v15 = vadd.f32 %v523_v4, %v522_v50  ;;  %v349_v58 = vrot.slane %v348_v14, 4  ;;  %v1088_v48 = vpop.eup %1087  ;;  %v215_v0 = vrot.slane %v214_v12, 2 }
  0x8f   : > { %v473_v8 = vrot.slane %v173_v38, 6  ;;  %v474_v19 = vrot.slane %v446_v2, 6  ;;  %v266_v9 = vand.u32 2147483648, %v1600_v27  ;;  %vm399_vm10 = vcmp.eq.f32.partialorder %v1625_v52, inf }
  0x90   : > { %v613_v6 = vmul.f32 %v986_v63, %v986_v63  ;;  %1091 = vrsqrt.f32 %v1639_v15  ;;  %vm265_vm11 = vcmp.eq.f32.partialorder %v1600_v27, 0.0  ;;  %vm401_vm14 = vcmp.eq.f32.partialorder %v1625_v52, 0.0  ;;  %v1698_v63 = vld [vmem:[%s1354_s5 + $0x70] sm:$0xff] }
  0x91   : > { %v402_v21 = vand.u32 2147483648, %v1625_v52  ;;  %v714_v22 = vadd.f32 %v713_v17, %v712_v7  ;;  %v216_v62 = vadd.f32 %v215_v0, %v214_v12  ;;  %v262_v24 = vmul.f32 %v1088_v48, %v1600_v27 }
  0x92   : > { %v782_v23 = vsel %vm457_vm1, %v774_v18, %v613_v6  ;;  %v350_v25 = vadd.f32 %v349_v58, %v348_v14  ;;  %v475_v26 = vsel %vm457_vm1, %v473_v8, %v474_v19  ;;  %v631_v36 = vrot.slane %v1623_v41, 3 }
  0x93   : > { %v790_v28 = vsel %vm176_vm0, %v782_v23, %v757_v10  ;;  %v715_v29 = vrot.slane %v714_v22, 1  ;;  %v217_v30 = vrot.slane %v216_v62, 1  ;;  %v525_v32 = vsel %vm176_vm0, %v475_v26, 0.0 }
  0x94   : > { %v799_v33 = vsel %vm795_vm12, %v790_v28, %v629_v55  ;;  %v351_v34 = vrot.slane %v350_v25, 2  ;;  %v526_v35 = vrot.slane %v525_v32, 4  ;;  %v1090_v37 = vpop.eup %1089  ;;  %v1661_v5 = vmul.f32 %v158_v13, %v158_v13 }
  0x95   : > { %v808_v38 = vsel %vm804_vm13, %v799_v33, 0.0  ;;  %v716_v40 = vadd.f32 %v715_v29, %v714_v22  ;;  %v1659_v1 = vadd.f32 %v217_v30, %v216_v62  ;;  %v398_v59 = vmul.f32 %v1090_v37, %v1625_v52 }
  0x96   : > { %v817_v31 = vsel %vm813_vm15, %v808_v38, 0.0  ;;  %v352_v42 = vadd.f32 %v351_v34, %v350_v25  ;;  %v527_v11 = vadd.f32 %v526_v35, %v525_v32  ;;  %vm576_vm3 = vcmp.eq.f32.partialorder %v1639_v15, inf }
  0x97   : > { %v826_v55 = vsel %vm822_vm2, %v817_v31, 0.0  ;;  %vm578_vm4 = vcmp.eq.f32.partialorder %v1639_v15, 0.0  ;;  %1093 = vrsqrt.f32 %v1659_v1  ;;  %v264_v43 = vsel %vm263_vm8, %v1600_v27, %v262_v24 }
  0x98   : > { %838 = vst [vmem:[%s1506_s27 + $0x18] sm:$0xff] %v826_v55  ;;  %v400_v44 = vsel %vm399_vm10, %v1625_v52, %v398_v59  ;;  %v579_v46 = vand.u32 2147483648, %v1639_v15  ;;  %v353_v47 = vrot.slane %v352_v42, 1  ;;  %v742_v39 = vmul.f32 %v716_v40, %v1561_v45 }
  0x99   : > { %v403_v20 = vsel %vm401_vm14, %v402_v21, %v400_v44  ;;  %v528_v51 = vrot.slane %v527_v11, 2  ;;  %v647_v53 = vsub.f32 %v1623_v41, %v631_v36  ;;  %v219_v60 = vsel %vm176_vm0, %v1661_v5, 0.0 }
  0x9a   : > { %v1092_v56 = vpop.eup %1091  ;;  %v979_v57 = vadd.f32 -1.0, %v403_v20  ;;  %v1683_v50 = vadd.f32 %v353_v47, %v352_v42  ;;  %v303_v61 = vrot.slane %v1661_v5, 3  ;;  %v220_v54 = vrot.slane %v219_v60, 4  ;;  %v159_v20 = vld [vmem:[%s1354_s5 + $0x38] sm:$0xff] }
  0x9b   : > { %v575_v52 = vmul.f32 %v1092_v56, %v1639_v15  ;;  %v529_v2 = vadd.f32 %v528_v51, %v527_v11  ;;  %v655_v3 = vmul.f32 %v647_v53, %v647_v53  ;;  %v267_v4 = vsel %vm265_vm11, %v266_v9, %v264_v43 }
  0x9c   : > { %v437_v7 = vmul.f32 %v979_v57, %v979_v57  ;;  %vm270_vm5 = vcmp.eq.f32.partialorder %v1659_v1, inf  ;;  %1095 = vrsqrt.f32 %v1683_v50  ;;  %v273_v10 = vand.u32 2147483648, %v1659_v1 }
  0x9d   : > { %v577_v49 = vsel %vm576_vm3, %v1639_v15, %v575_v52  ;;  %v530_v12 = vrot.slane %v529_v2, 1  ;;  %v671_v14 = vrot.slane %v655_v3, 1  ;;  %v758_v27 = vrot.slane %v742_v39, 4 }
  0x9e   : > { %v580_v17 = vsel %vm578_vm4, %v579_v46, %v577_v49  ;;  %vm272_vm6 = vcmp.eq.f32.partialorder %v1659_v1, 0.0  ;;  %v221_v58 = vadd.f32 %v220_v54, %v219_v60  ;;  %v355_v48 = vsel %vm176_vm0, %v303_v61, 0.0 }
  0x9f   : > { %v987_v18 = vadd.f32 -1.0, %v580_v17  ;;  %v1704_v0 = vadd.f32 %v530_v12, %v529_v2  ;;  %v717_v8 = vsel %vm176_vm0, %v671_v14, 0.0  ;;  %v356_v19 = vrot.slane %v355_v48, 4  ;;  %v1749_v2 = vld [vmem:[%s1354_s5 + $0x78] sm:$0xff] }
  0xa0   : > { %v775_v6 = vsel %vm770_vm9, %v267_v4, %v437_v7  ;;  %v718_v9 = vrot.slane %v717_v8, 4  ;;  %v222_v21 = vrot.slane %v221_v58, 2  ;;  %v447_v15 = vmul.f32 %v1698_v63, %v1698_v63 }
  0xa1   : > { %v1094_v22 = vpop.eup %1093  ;;  %v614_v62 = vmul.f32 %v987_v18, %v987_v18  ;;  %vm406_vm7 = vcmp.eq.f32.partialorder %v1683_v50, inf  ;;  %1097 = vrsqrt.f32 %v1704_v0  ;;  %v476_v23 = vrot.slane %v1661_v5, 6 }
  0xa2   : > { %v269_v24 = vmul.f32 %v1094_v22, %v1659_v1  ;;  %vm408_vm8 = vcmp.eq.f32.partialorder %v1683_v50, 0.0  ;;  %v719_v25 = vadd.f32 %v718_v9, %v717_v8  ;;  %v223_v26 = vadd.f32 %v222_v21, %v221_v58 }
  0xa3   : > { %v783_v13 = vsel %vm457_vm1, %v775_v6, %v614_v62  ;;  %v409_v28 = vand.u32 2147483648, %v1683_v50  ;;  %v357_v29 = vadd.f32 %v356_v19, %v355_v48  ;;  %v477_v30 = vrot.slane %v447_v15, 6 }
  0xa4   : > { %v791_v32 = vsel %vm176_vm0, %v783_v13, %v758_v27  ;;  %v720_v33 = vrot.slane %v719_v25, 2  ;;  %v224_v34 = vrot.slane %v223_v26, 1  ;;  %v632_v35 = vrot.slane %v1698_v63, 3 }
  0xa5   : > { %v800_v37 = vsel %vm795_vm12, %v791_v32, %v630_v16  ;;  %v271_v38 = vsel %vm270_vm5, %v1659_v1, %v269_v24  ;;  %v358_v40 = vrot.slane %v357_v29, 2  ;;  %v478_v5 = vsel %vm457_vm1, %v476_v23, %v477_v30 }
  0xa6   : > { %v1096_v31 = vpop.eup %1095  ;;  %v809_v59 = vsel %vm804_vm13, %v800_v37, 0.0  ;;  %v721_v42 = vadd.f32 %v720_v33, %v719_v25  ;;  %v1727_v11 = vadd.f32 %v224_v34, %v223_v26  ;;  %v532_v55 = vsel %vm176_vm0, %v478_v5, 0.0 }
  0xa7   : > { %v818_v45 = vsel %vm813_vm15, %v809_v59, 0.0  ;;  %v405_v16 = vmul.f32 %v1096_v31, %v1683_v50  ;;  %v359_v43 = vadd.f32 %v358_v40, %v357_v29  ;;  %v533_v44 = vrot.slane %v532_v55, 4 }
  0xa8   : > { %v827_v46 = vsel %vm822_vm2, %v818_v45, 0.0  ;;  %vm583_vm10 = vcmp.eq.f32.partialorder %v1704_v0, inf  ;;  %vm585_vm11 = vcmp.eq.f32.partialorder %v1704_v0, 0.0  ;;  %v722_v47 = vrot.slane %v721_v42, 1 }
  0xa9   : > { %839 = vst [vmem:[%s1506_s27 + $0x20] sm:$0xff] %v827_v46  ;;  %v274_v39 = vsel %vm272_vm6, %v273_v10, %v271_v38  ;;  %v407_v51 = vsel %vm406_vm7, %v1683_v50, %v405_v16  ;;  %v586_v53 = vand.u32 2147483648, %v1704_v0  ;;  %v360_v56 = vrot.slane %v359_v43, 1 }
  0xaa   : > { %v410_v57 = vsel %vm408_vm8, %v409_v28, %v407_v51  ;;  %v723_v60 = vadd.f32 %v722_v47, %v721_v42  ;;  %v534_v61 = vadd.f32 %v533_v44, %v532_v55  ;;  %v648_v52 = vsub.f32 %v1698_v63, %v632_v35 }
  0xab   : > { %v1098_v1 = vpop.eup %1097  ;;  %v980_v3 = vadd.f32 -1.0, %v410_v57  ;;  %1099 = vrsqrt.f32 %v1727_v11  ;;  %v1752_v54 = vadd.f32 %v360_v56, %v359_v43  ;;  %v175_v4 = vmul.f32 %v159_v20, %v159_v20 }
  0xac   : > { %v582_v7 = vmul.f32 %v1098_v1, %v1704_v0  ;;  %v743_v50 = vmul.f32 %v723_v60, %v1623_v41  ;;  %v535_v49 = vrot.slane %v534_v61, 2  ;;  %v656_v10 = vmul.f32 %v648_v52, %v648_v52 }
  0xad   : > { %v438_v12 = vmul.f32 %v980_v3, %v980_v3  ;;  %1101 = vrsqrt.f32 %v1752_v54  ;;  %v448_v14 = vmul.f32 %v1749_v2, %v1749_v2  ;;  %v226_v19 = vsel %vm176_vm0, %v175_v4, 0.0 }
  0xae   : > { %v584_v17 = vsel %vm583_vm10, %v1704_v0, %v582_v7  ;;  %v759_v27 = vrot.slane %v743_v50, 4  ;;  %v536_v58 = vadd.f32 %v535_v49, %v534_v61  ;;  %v672_v8 = vrot.slane %v656_v10, 1 }
  0xaf   : > { %v587_v48 = vsel %vm585_vm11, %v586_v53, %v584_v17  ;;  %v776_v18 = vsel %vm770_vm9, %v274_v39, %v438_v12  ;;  %v227_v21 = vrot.slane %v226_v19, 4  ;;  %v304_v15 = vrot.slane %v175_v4, 3 }
  0xb0   : > { %v988_v6 = vadd.f32 -1.0, %v587_v48  ;;  %v537_v9 = vrot.slane %v536_v58, 1  ;;  %v724_v22 = vsel %vm176_vm0, %v672_v8, 0.0  ;;  %v479_v62 = vrot.slane %v175_v4, 6 }
  0xb1   : > { %v480_v23 = vrot.slane %v448_v14, 6  ;;  %v633_v24 = vrot.slane %v1749_v2, 3  ;;  %v725_v0 = vrot.slane %v724_v22, 4  ;;  %v228_v13 = vadd.f32 %v227_v21, %v226_v19 }
  0xb2   : > { %v615_v25 = vmul.f32 %v988_v6, %v988_v6  ;;  %v1768_v26 = vadd.f32 %v537_v9, %v536_v58  ;;  %v362_v28 = vsel %vm176_vm0, %v304_v15, 0.0  ;;  %vm277_vm14 = vcmp.eq.f32.partialorder %v1727_v11, inf }
  0xb3   : > { %v649_v29 = vsub.f32 %v1749_v2, %v633_v24  ;;  %v481_v32 = vsel %vm457_vm1, %v479_v62, %v480_v23  ;;  %vm413_vm3 = vcmp.eq.f32.partialorder %v1752_v54, inf  ;;  %vm415_vm4 = vcmp.eq.f32.partialorder %v1752_v54, 0.0 }
  0xb4   : > { %v784_v30 = vsel %vm457_vm1, %v776_v18, %v615_v25  ;;  %1103 = vrsqrt.f32 %v1768_v26  ;;  %v726_v37 = vadd.f32 %v725_v0, %v724_v22  ;;  %v416_v40 = vand.u32 2147483648, %v1752_v54 }
  0xb5   : > { %v1100_v33 = vpop.eup %1099  ;;  %v792_v34 = vsel %vm176_vm0, %v784_v30, %v759_v27  ;;  %v229_v5 = vrot.slane %v228_v13, 2  ;;  %v363_v31 = vrot.slane %v362_v28, 4  ;;  %v539_v45 = vsel %vm176_vm0, %v481_v32, 0.0 }
  0xb6   : > { %v801_v38 = vsel %vm795_vm12, %v792_v34, %v631_v36  ;;  %v727_v55 = vrot.slane %v726_v37, 2  ;;  %v657_v16 = vmul.f32 %v649_v29, %v649_v29  ;;  %v540_v20 = vrot.slane %v539_v45, 4 }
  0xb7   : > { %v1102_v59 = vpop.eup %1101  ;;  %v810_v42 = vsel %vm804_vm13, %v801_v38, 0.0  ;;  %v230_v46 = vadd.f32 %v229_v5, %v228_v13  ;;  %v364_v41 = vadd.f32 %v363_v31, %v362_v28  ;;  %v276_v51 = vmul.f32 %v1100_v33, %v1727_v11 }
  0xb8   : > { %v819_v43 = vsel %vm813_vm15, %v810_v42, 0.0  ;;  %v412_v44 = vmul.f32 %v1102_v59, %v1752_v54  ;;  %v728_v47 = vadd.f32 %v727_v55, %v726_v37  ;;  %v673_v39 = vrot.slane %v657_v16, 1 }
  0xb9   : > { %v828_v36 = vsel %vm822_vm2, %v819_v43, 0.0  ;;  %v231_v56 = vrot.slane %v230_v46, 1  ;;  %v365_v57 = vrot.slane %v364_v41, 2  ;;  %v541_v52 = vadd.f32 %v540_v20, %v539_v45 }
  0xba   : > { %840 = vst [vmem:[%s1506_s27 + $0x28] sm:$0xff] %v828_v36  ;;  %v414_v53 = vsel %vm413_vm3, %v1752_v54, %v412_v44  ;;  %v729_v61 = vrot.slane %v728_v47, 1  ;;  %v731_v1 = vsel %vm176_vm0, %v673_v39, 0.0  ;;  %v280_v49 = vand.u32 2147483648, %v1727_v11 }
  0xbb   : > { %v417_v60 = vsel %vm415_vm4, %v416_v40, %v414_v53  ;;  %v1798_v4 = vadd.f32 %v231_v56, %v230_v46  ;;  %v366_v7 = vadd.f32 %v365_v57, %v364_v41  ;;  %v732_v50 = vrot.slane %v731_v1, 4 }
  0xbc   : > { %v981_v3 = vadd.f32 -1.0, %v417_v60  ;;  %v730_v10 = vadd.f32 %v729_v61, %v728_v47  ;;  %v542_v12 = vrot.slane %v541_v52, 2  ;;  %v278_v17 = vsel %vm277_vm14, %v1727_v11, %v276_v51 }
  0xbd   : > { %vm279_vm5 = vcmp.eq.f32.partialorder %v1727_v11, 0.0  ;;  %vm590_vm6 = vcmp.eq.f32.partialorder %v1768_v26, inf  ;;  %v593_v54 = vand.u32 2147483648, %v1768_v26  ;;  %vm592_vm7 = vcmp.eq.f32.partialorder %v1768_v26, 0.0 }
  0xbe   : > { %v1104_v14 = vpop.eup %1103  ;;  %1105 = vrsqrt.f32 %v1798_v4  ;;  %v367_v58 = vrot.slane %v366_v7, 1  ;;  %v439_v48 = vmul.f32 %v981_v3, %v981_v3  ;;  %v744_v18 = vmul.f32 %v730_v10, %v1698_v63 }
  0xbf   : > { %v589_v27 = vmul.f32 %v1104_v14, %v1768_v26  ;;  %v543_v8 = vadd.f32 %v542_v12, %v541_v52  ;;  %v733_v19 = vadd.f32 %v732_v50, %v731_v1  ;;  %v281_v6 = vsel %vm279_vm5, %v280_v49, %v278_v17 }
  0xc0   : > { %v368_v11 = vadd.f32 %v367_v58, %v366_v7  ;;  %v760_v23 = vrot.slane %v744_v18, 4  ;;  %v777_v25 = vsel %vm770_vm9, %v281_v6, %v439_v48  ;;  %vm284_vm8 = vcmp.eq.f32.partialorder %v1798_v4, inf }
  0xc1   : > { %v591_v9 = vsel %vm590_vm6, %v1768_v26, %v589_v27  ;;  %v544_v15 = vrot.slane %v543_v8, 1  ;;  %v734_v22 = vrot.slane %v733_v19, 2  ;;  %vm286_vm14 = vcmp.eq.f32.partialorder %v1798_v4, 0.0 }
  0xc2   : > { %v594_v21 = vsel %vm592_vm7, %v593_v54, %v591_v9  ;;  %1107 = vrsqrt.f32 %v368_v11  ;;  %vm420_vm10 = vcmp.eq.f32.partialorder %v368_v11, inf  ;;  %v423_v31 = vand.u32 2147483648, %v368_v11 }
  0xc3   : > { %v989_v62 = vadd.f32 -1.0, %v594_v21  ;;  %v545_v0 = vadd.f32 %v544_v15, %v543_v8  ;;  %v735_v28 = vadd.f32 %v734_v22, %v733_v19  ;;  %vm422_vm11 = vcmp.eq.f32.partialorder %v368_v11, 0.0 }
  0xc5   : > { %v616_v13 = vmul.f32 %v989_v62, %v989_v62  ;;  %1109 = vrsqrt.f32 %v545_v0  ;;  %v736_v34 = vrot.slane %v735_v28, 1  ;;  %vm597_vm3 = vcmp.eq.f32.partialorder %v545_v0, inf }
  0xc6   : > { %v600_v16 = vand.u32 2147483648, %v545_v0  ;;  %vm599_vm4 = vcmp.eq.f32.partialorder %v545_v0, 0.0 }
  0xc7   : > { %v785_v29 = vsel %vm457_vm1, %v777_v25, %v616_v13  ;;  %v737_v63 = vadd.f32 %v736_v34, %v735_v28 }
  0xc8   : > { %v793_v30 = vsel %vm176_vm0, %v785_v29, %v760_v23  ;;  %v1106_v32 = vpop.eup %1105 }
  0xc9   : > { %v802_v26 = vsel %vm795_vm12, %v793_v30, %v632_v35  ;;  %v283_v40 = vmul.f32 %v1106_v32, %v1798_v4  ;;  %v287_v35 = vand.u32 2147483648, %v1798_v4  ;;  %v745_v41 = vmul.f32 %v737_v63, %v1749_v2 }
  0xca   : > { %v811_v33 = vsel %vm804_vm13, %v802_v26, 0.0 }
  0xcb   : > { %v820_v37 = vsel %vm813_vm15, %v811_v33, 0.0  ;;  %v285_v55 = vsel %vm284_vm8, %v1798_v4, %v283_v40  ;;  %v761_v53 = vrot.slane %v745_v41, 4 }
  0xcc   : > { %v829_v38 = vsel %vm822_vm2, %v820_v37, 0.0  ;;  %v1108_v5 = vpop.eup %1107  ;;  %v288_v36 = vsel %vm286_vm14, %v287_v35, %v285_v55 }
  0xcd   : > { %841 = vst [vmem:[%s1506_s27 + $0x30] sm:$0xff] %v829_v38  ;;  %v419_v59 = vmul.f32 %v1108_v5, %v368_v11 }
  0xcf   : > { %v1110_v42 = vpop.eup %1109  ;;  %v421_v45 = vsel %vm420_vm10, %v368_v11, %v419_v59 }
  0xd0   : > { %v424_v43 = vsel %vm422_vm11, %v423_v31, %v421_v45  ;;  %v596_v44 = vmul.f32 %v1110_v42, %v545_v0 }
  0xd1   : > { %v982_v46 = vadd.f32 -1.0, %v424_v43 }
  0xd2   : > { %v598_v47 = vsel %vm597_vm3, %v545_v0, %v596_v44 }
  0xd3   : > { %v440_v20 = vmul.f32 %v982_v46, %v982_v46  ;;  %v601_v39 = vsel %vm599_vm4, %v600_v16, %v598_v47 }
  0xd4   : > { %v990_v51 = vadd.f32 -1.0, %v601_v39 }
  0xd5   : > { %v778_v56 = vsel %vm770_vm9, %v288_v36, %v440_v20 }
  0xd6   : > { %v617_v57 = vmul.f32 %v990_v51, %v990_v51 }
  0xd8   : > { %v786_v60 = vsel %vm457_vm1, %v778_v56, %v617_v57 }
  0xd9   : > { %v794_v61 = vsel %vm176_vm0, %v786_v60, %v761_v53 }
  0xda   : > { %v803_v52 = vsel %vm795_vm12, %v794_v61, %v633_v24 }
  0xdb   : > { %v812_v1 = vsel %vm804_vm13, %v803_v52, 0.0 }
  0xdc   : > { %v821_v3 = vsel %vm813_vm15, %v812_v1, 0.0 }
  0xdd   : > { %v830_v4 = vsel %vm822_vm2, %v821_v3, 0.0 }
  0xde   : > { %842 = vst [vmem:[%s1506_s27 + $0x38] sm:$0xff] %v830_v4 }
  0xdf   : > { %1154 = shalt.err (!%p1151_p3)
}
  0xe0   : > { %s1155_s23 = scalar_lea.hbm %s1841_s13, 1024  ;;  %s1159_s26 = scalar_lea.hbm %s1893_s1, 2048 }
  0xe1   : > { %p1156_p4 = scmp.ne.s32.totalorder %s1841_s13, %s1155_s23  ;;  %p1160_p12 = scmp.lt.u32.totalorder %s1841_s13, %s1893_s1 }
  0xe2   : > { %p1161_p2 = scmp.lt.u32.totalorder %s1159_s26, %s1155_s23  ;;  %p1163_p8 = scmp.lt.u32.totalorder %s1155_s23, %s1841_s13 }
  0xe3   : > { %p1157_p6 = pnand %p1156_p4, %p1900_p9 }
  0xe4   : > { %p1162_p5 = por %p1161_p2, %p1160_p12 }
  0xe5   : > { %p1158_p7 = pneg %p1157_p6 }
  0xe6   : > { %p1164_p11 = por %p1163_p8, %p1162_p5 }
  0xe8   : > { %p1165_p0 = pnand %p1164_p11, %p1158_p7 }
  0xea   : > { %1168 = shalt.err (!%p1165_p0)
}
  0xeb   : > { %1000 = dma.vmem_to_hbm [thread:$0]  (%p1900_p9), %s1843_s30, 1024, %s1841_s13, %s872_s9  }
  0xec PF: > { %s898_s4 = sand.u32 1, %s1203_s6   ;;  %p1901_p10 = scmp.ne.s32.totalorder %s1898_s21, 0 }
  0xed   : > { %p1902_p13 = scmp.ge.s32.totalorder %s1223_s11, 2  ;;  %s899_s5 = scalar_lea.sflag [#allocation4], %s898_s4 }
  0xef   : > { %p1007_p1 = pnand %p1902_p13, %p1901_p10 }
  0xf1   : > { %1198 = dma.done.wait (!%p1007_p1), %s899_s5, 1024  }
  0xf2   : > { %1200 = vsyncadd (!%p1007_p1), %s899_s5, 4294966272  ;;  %s17_s11 = sadd.s32 1, %s1223_s11   ;;  %s1903_s6 = smov %s1207_s7 }
  0xf3   : > { %p14_p3 = scmp.ge.s32.totalorder %s17_s11, 4   ;;  %s1904_s7 = smov %s1211_s8 }
  0xf4   : > { %s1905_s8 = smov %s1296_s20  ;;  %s1906_s9 = smov %s1219_s10 }
  0xf5   : > { %s1907_s10 = smov %s1909_s14  ;;  %16 = sbr.rel (!%p14_p3) target bundleno = 6 (0x6), region = 77 }
  0xfc   :  { %904 = vsyncpa [#allocation3], 1 }
  0xfd   :  { %906 = vsyncpa [#allocation3 + $0x1], 1 }
  0xfe   :  { %907 = vsyncpa [#allocation4], 1 }
  0xff   :  { %909 = vsyncpa [#allocation4 + $0x1], 1 }

</bundles_post_ra>
